<compile_context>
chip_gen: v5e
topology: v5e:2x2
jax: 0.10.0
libtpu: 0.0.40
codegen_flags: <defaults>
</compile_context>

<pallas_src>
import functools
import math

import jax
import jax.numpy as jnp
from jax import lax
from jax.experimental import pallas as pl
from jax.experimental.pallas import tpu as pltpu

_BN_EPS = 1e-5


def _round_up(x, m):
    return (x + m - 1) // m * m


def _pick_tile(dim, maximum, quantum):
    """Largest tile <= maximum (a multiple of quantum) that divides dim."""
    t = min(maximum, dim)
    t -= t % quantum
    while dim % t:
        t -= quantum
    return t


# ----------------------------------------------------------------------------
# Pallas kernel: C = A @ B with bf16 operands and in-place f32 accumulation.
# ----------------------------------------------------------------------------
def _matmul_kernel(a_ref, b_ref, o_ref):
    # Output block index_map is invariant in k, so o_ref stays resident in VMEM
    # across the reduction axis -> accumulate directly, no scratch needed.
    @pl.when(pl.program_id(2) == 0)
    def _():
        o_ref[...] = jnp.zeros_like(o_ref)

    o_ref[...] += jnp.dot(a_ref[...], b_ref[...],
                          preferred_element_type=jnp.float32)


def _matmul_bf16(a, b_padded):
    """f32-accumulated (a @ b_padded).

    `a` is un-padded (M, K) float; `b_padded` is (Kp, Np) bf16, zero-padded to
    multiples of 128 at init time (scale already folded in).  Returns (M, Np) f32.
    """
    M, K = a.shape
    Kp, Np = b_padded.shape

    tm = min(256, _round_up(M, 16))
    mp = _round_up(M, tm)
    tn = _pick_tile(Np, 256, 128)
    tk = _pick_tile(Kp, 512, 128)

    a_p = jnp.pad(a.astype(jnp.bfloat16), ((0, mp - M), (0, Kp - K)))

    out = pl.pallas_call(
        _matmul_kernel,
        out_shape=jax.ShapeDtypeStruct((mp, Np), jnp.float32),
        grid_spec=pltpu.PrefetchScalarGridSpec(
            num_scalar_prefetch=0,
            grid=(mp // tm, Np // tn, Kp // tk),
            in_specs=[
                pl.BlockSpec((tm, tk), lambda i, j, k: (i, k)),
                pl.BlockSpec((tk, tn), lambda i, j, k: (k, j)),
            ],
            out_specs=pl.BlockSpec((tm, tn), lambda i, j, k: (i, j)),
        ),
        compiler_params=pltpu.CompilerParams(
            dimension_semantics=("parallel", "parallel", "arbitrary")),
    )(a_p, b_padded)
    return out[:M]


# ----------------------------------------------------------------------------
# DeConvertBlock forward: matmul (Pallas) + col2im overlap-add + shift + ReLU.
# ----------------------------------------------------------------------------
@functools.partial(
    jax.jit,
    static_argnames=("cout", "kernel_size", "stride", "padding", "output_padding"))
def _deconvert_forward(x_nchw, b_mat, shift, *, cout, kernel_size, stride,
                       padding, output_padding):
    kh = kw = kernel_size
    s = stride
    x = jnp.transpose(x_nchw, (0, 2, 3, 1))            # NHWC
    n, h, w, cin = x.shape

    # Minimal-FLOP matmul: every input pixel against all kH*kW*Cout taps.
    cols = _matmul_bf16(x.reshape(n * h * w, cin), b_mat)
    cols = cols[:, :kh * kw * cout].reshape(n, h, w, kh, kw, cout)

    # col2im overlap-add: tap (i, j) of input pixel (ih, iw) lands at canvas
    # position (ih*s + i, iw*s + j); then crop `padding` and keep
    # Hout = (H-1)*s - 2*p + k + output_padding rows/cols (PyTorch semantics).
    hc = s * h + kh - 1
    wc = s * w + kw - 1
    h_out = (h - 1) * s - 2 * padding + kh + output_padding
    w_out = (w - 1) * s - 2 * padding + kw + output_padding
    canvas = jnp.zeros((n, hc, wc, cout), jnp.float32)
    for i in range(kh):
        for j in range(kw):
            c = cols[:, :, :, i, j, :]
            c = jnp.pad(c[:, :, None, :, None, :],
                        ((0, 0), (0, 0), (0, s - 1), (0, 0), (0, s - 1), (0, 0)))
            c = c.reshape(n, s * h, s * w, cout)
            canvas = canvas + jnp.pad(
                c, ((0, 0), (i, kh - 1 - i), (j, kw - 1 - j), (0, 0)))
    out = canvas[:, padding:padding + h_out, padding:padding + w_out, :]

    # Folded BatchNorm shift (+ ConvTranspose bias) and ReLU.
    out = jnp.maximum(out + shift, 0.0)
    return jnp.transpose(out, (0, 3, 1, 2))            # back to NCHW


class DeConvertBlock:
    """ConvTranspose2d + BatchNorm2d + ReLU (PyTorch DeConvertBlock).

    BatchNorm2d is applied in eval mode with default running stats
    (gamma=1, beta=0, mean=0, var=1); its per-channel scale is folded into the
    weight matrix and the remaining shift (scale*bias + beta - scale*mean) is
    applied in the epilogue.
    """

    def __init__(self, key, input_size, output_size, kernel_size, stride,
                 padding, output_padding, bias=True):
        k_w, k_b = jax.random.split(key)
        # PyTorch ConvTranspose2d weight layout: (Cin, Cout, kH, kW).
        fan_in = input_size * kernel_size * kernel_size
        w_t = jax.random.normal(
            k_w, (input_size, output_size, kernel_size, kernel_size),
            jnp.float32) / math.sqrt(fan_in)
        b = (jax.random.normal(k_b, (output_size,), jnp.float32) * 0.01
             if bias else jnp.zeros((output_size,), jnp.float32))

        bn_scale = 1.0 / math.sqrt(1.0 + _BN_EPS)      # gamma / sqrt(var + eps)
        self.shift = jnp.asarray(bn_scale * b, jnp.float32)

        # B[cin, (i*kW + j)*Cout + cout] = bn_scale * W_t[cin, cout, i, j],
        # zero-padded ONCE to (rup(Cin,128), rup(kH*kW*Cout,128)), stored bf16.
        bmat = jnp.transpose(w_t, (0, 2, 3, 1)).reshape(
            input_size, kernel_size * kernel_size * output_size) * bn_scale
        kp = _round_up(input_size, 128)
        np_ = _round_up(bmat.shape[1], 128)
        self.b_mat = jnp.pad(
            bmat, ((0, kp - input_size), (0, np_ - bmat.shape[1]))
        ).astype(jnp.bfloat16)

        self.cfg = dict(cout=output_size, kernel_size=kernel_size,
                        stride=stride, padding=padding,
                        output_padding=output_padding)

    def __call__(self, x_nchw):
        return _deconvert_forward(x_nchw, self.b_mat, self.shift, **self.cfg)


def _reference(block, x_nchw):
    """Pure-JAX reference (lax.conv with lhs_dilation) using the same
    bf16-rounded folded weights, f32 accumulation."""
    cfg = block.cfg
    k, s, p, op = (cfg["kernel_size"], cfg["stride"], cfg["padding"],
                   cfg["output_padding"])
    cin = x_nchw.shape[1]
    cout = cfg["cout"]
    b_f32 = block.b_mat[:cin, :k * k * cout].astype(jnp.float32)
    w_hwio = jnp.transpose(b_f32.reshape(cin, k, k, cout), (1, 2, 0, 3))
    w_flip = w_hwio[::-1, ::-1]                      # spatially flipped kernel
    x = jnp.transpose(x_nchw, (0, 2, 3, 1)).astype(jnp.bfloat16).astype(jnp.float32)
    y = lax.conv_general_dilated(
        x, w_flip, window_strides=(1, 1),
        padding=((k - 1 - p, k - 1 - p + op), (k - 1 - p, k - 1 - p + op)),
        lhs_dilation=(s, s),
        dimension_numbers=("NHWC", "HWIO", "NHWC"),
        precision=lax.Precision.HIGHEST)
    y = jnp.maximum(y + block.shift, 0.0)
    return jnp.transpose(y, (0, 3, 1, 2))


if __name__ == "__main__":
    root = jax.random.PRNGKey(0)
    k_x, k_p = jax.random.split(root)

    # DeConvertBlock(input_size=64, output_size=32, kernel_size=3, stride=2,
    #                padding=1, output_padding=1) — upsamples 16x16 -> 32x32.
    block = DeConvertBlock(k_p, input_size=64, output_size=32, kernel_size=3,
                           stride=2, padding=1, output_padding=1, bias=True)
    x = jax.random.normal(k_x, (2, 64, 16, 16), jnp.float32)   # NCHW

    y = block(x)
    jax.block_until_ready(y)
    assert y.shape == (2, 32, 32, 32), y.shape

    y_ref = _reference(block, x)
    err = float(jnp.max(jnp.abs(y - y_ref)))
    assert err < 1e-2, f"max abs err {err}"

    print("KERNEL_OK")
</pallas_src>

<mosaic_0001>
module attributes {stable_mosaic.version = 11 : i64} {
  func.func @_matmul_kernel(%arg0: i32, %arg1: i32, %arg2: i32, %arg3: memref<256x128xbf16, #tpu.memory_space<vmem>>, %arg4: memref<128x128xbf16, #tpu.memory_space<vmem>>, %arg5: memref<256x128xf32, #tpu.memory_space<vmem>>) attributes {dimension_semantics = [#tpu.dimension_semantics<parallel>, #tpu.dimension_semantics<parallel>, #tpu.dimension_semantics<arbitrary>], iteration_bounds = array<i64: 2, 3, 1>, scalar_prefetch = 0 : i64, scratch_operands = 0 : i64, tpu.core_type = #tpu.core_type<tc>, window_params = [{transform_indices = @transform_0, window_bounds = array<i64: 256, 128>}, {transform_indices = @transform_1, window_bounds = array<i64: 128, 128>}, {transform_indices = @transform_2, window_bounds = array<i64: 256, 128>}]} {
    %c0_i32 = arith.constant 0 : i32
    %0 = arith.cmpi eq, %arg2, %c0_i32 : i32
    %1 = arith.extui %0 : i1 to i32
    %c0_i32_0 = arith.constant 0 : i32
    %2 = arith.cmpi ne, %1, %c0_i32_0 : i32
    scf.if %2 {
      %cst_8 = arith.constant 0.000000e+00 : f32
      %9 = vector.broadcast %cst_8 : f32 to vector<256x128xf32>
      %c0_9 = arith.constant 0 : index
      %c0_10 = arith.constant 0 : index
      %10 = vector.load %arg5[%c0_9, %c0_10] : memref<256x128xf32, #tpu.memory_space<vmem>>, vector<256x128xf32>
      tpu.vector_store %arg5[%c0_9, %c0_10], %9 {strides = array<i32>} : memref<256x128xf32, #tpu.memory_space<vmem>>, vector<256x128xf32>,
    } else {
    }
    %c0 = arith.constant 0 : index
    %c0_1 = arith.constant 0 : index
    %3 = vector.load %arg5[%c0, %c0_1] : memref<256x128xf32, #tpu.memory_space<vmem>>, vector<256x128xf32>
    %c0_2 = arith.constant 0 : index
    %c0_3 = arith.constant 0 : index
    %4 = vector.load %arg3[%c0_2, %c0_3] : memref<256x128xbf16, #tpu.memory_space<vmem>>, vector<256x128xbf16>
    %c0_4 = arith.constant 0 : index
    %c0_5 = arith.constant 0 : index
    %5 = vector.load %arg4[%c0_4, %c0_5] : memref<128x128xbf16, #tpu.memory_space<vmem>>, vector<128x128xbf16>
    %cst = arith.constant dense<0.000000e+00> : vector<256x128xf32>
    %6 = tpu.matmul %4, %5, %cst {dimension_numbers = #tpu.dot_dimension_numbers<[1], [0], [0], [1], [0, 0, 1, 1], [], []>} : vector<256x128xbf16>, vector<128x128xbf16>, vector<256x128xf32> -> vector<256x128xf32>
    %7 = arith.addf %3, %6 : vector<256x128xf32>
    %c0_6 = arith.constant 0 : index
    %c0_7 = arith.constant 0 : index
    %8 = vector.load %arg5[%c0_6, %c0_7] : memref<256x128xf32, #tpu.memory_space<vmem>>, vector<256x128xf32>
    tpu.vector_store %arg5[%c0_6, %c0_7], %7 {strides = array<i32>} : memref<256x128xf32, #tpu.memory_space<vmem>>, vector<256x128xf32>,
    return
  }
  func.func @transform_0(%arg0: i32, %arg1: i32, %arg2: i32) -> (i32, i32) {
    %c0_i32 = arith.constant 0 : i32
    return %arg0, %arg2 : i32, i32
  }
  func.func @transform_1(%arg0: i32, %arg1: i32, %arg2: i32) -> (i32, i32) {
    %c0_i32 = arith.constant 0 : i32
    return %arg2, %arg1 : i32, i32
  }
  func.func @transform_2(%arg0: i32, %arg1: i32, %arg2: i32) -> (i32, i32) {
    %c0_i32 = arith.constant 0 : i32
    return %arg0, %arg1 : i32, i32
  }
}

</mosaic_0001>

<bundles_post_ra>
// kernel: _deconvert_forward.1
= control target key start
LH: loop header
LB: loop body
LE: loop exit
PB: predicated region body
PF: predicated region fallthrough
CT: control target
= control target key end

     0   :  { %7 = vsyncpa [#allocation3], 0  ;;  %s1553_s0 = inlined_call_operand.vmem [shape: bf16[512,128], index: 0, kind: input, shape index: {}]   ;;  %s1554_s1 = inlined_call_operand.hbm [shape: bf16[128,384], index: 1, kind: input, shape index: {}]   ;;  %s1555_s2 = inlined_call_operand.vmem [shape: f32[512,384], index: 2, kind: output, shape index: {}]  }
   0x1   :  { %9 = vsyncpa [#allocation3 + $0x1], 0  ;;  %s1282_s9 = smov 0   ;;  %s1284_s10 = smov 0  }
   0x2   :  { %s1286_s11 = smov 0   ;;  %s1288_s12 = smov 0  }
   0x3   :  { %s1290_s13 = smov 0   ;;  %s1292_s14 = smov 0  }
   0x4   :  { %s1294_s15 = smov 0   ;;  %s1296_s16 = smov 0  }
   0x5   :  { %s1298_s17 = smov 0   ;;  %s1300_s18 = smov 0  }
   0x6 LB: > { %s897_s19 = sadd.s32 4294967295, %s1262_s18   ;;  %s30_s20 = sadd.s32 1, %s1254_s16  ;;  %s1262_s18 = sphi %s1300_s18, %s15_s18   ;;  %s1258_s17 = sphi %s1298_s17, %s1570_s17   ;;  %s1254_s16 = sphi %s1296_s16, %s1569_s16   ;;  %s1250_s15 = sphi %s1294_s15, %s1568_s15   ;;  %s1246_s14 = sphi %s1292_s14, %s1567_s14   ;;  %s1242_s13 = sphi %s1290_s13, %s1566_s13   ;;  %s1238_s12 = sphi %s1288_s12, %s1565_s12   ;;  %s1234_s11 = sphi %s1286_s11, %s1564_s11   ;;  %s1230_s10 = sphi %s1284_s10, %s1563_s10   ;;  %s1226_s9 = sphi %s1282_s9, %s1562_s9  }
   0x7   : > { %p32_p0 = scmp.ge.s32.totalorder %s30_s20, 3  ;;  %s34_s21 = sadd.s32 1, %s1258_s17 }
   0x8   : > { %s71_s22 = sadd.s32 1, %s1242_s13  ;;  %p78_p1 = scmp.ne.s32.totalorder %s1242_s13, %s1238_s12 }
   0x9   : > { %s1572_s20 = smov (%p32_p0, %s30_s20), 0  ;;  %s1574_s21 = smov (!%p32_p0, %s34_s21), %s1258_s17 }
   0xa   : > { %s67_s23 = ssub.s32 %s1254_s16, %s1572_s20  ;;  %p79_p2 = scmp.eq.s32.totalorder %s1262_s18, 0 }
   0xb   : > { %p36_p3 = scmp.ge.s32.totalorder %s1574_s21, 2  ;;  %p69_p4 = scmp.eq.s32.totalorder %s67_s23, 0 }
   0xc   : > { %p1342_p5 = por %p79_p2, %p78_p1  ;;  %p84_p6 = scmp.ne.s32.totalorder %s1238_s12, %s1234_s11 }
   0xd   : > { %s1576_s21 = smov (%p36_p3, %s1574_s21), 0  ;;  %p85_p7 = scmp.eq.s32.totalorder %s897_s19, 0 }
   0xe   : > { %1558 = sst [smem:[#allocation6_spill]] %s1576_s21  ;;  %s94_s26 = ssub.s32 %s1258_s17, %s1576_s21 }
   0xf   : > { %s1350_s25 = scalar_select %p69_p4, %s1242_s13, %s71_s22  }
  0x10   : > { %s96_s27 = sor.u32 %s94_s26, %s67_s23  ;;  %s99_s28 = sadd.s32 1, %s1230_s10 }
  0x11   : > { %p1355_p8 = por %p85_p7, %p84_p6  ;;  %p97_p9 = scmp.eq.s32.totalorder %s96_s27, 0 }
  0x12   : > { %p109_p10 = scmp.ne.s32.totalorder %s1230_s10, %s1226_s9  ;;  %p110_p11 = scmp.eq.s32.totalorder %s897_s19, 5 }
  0x13   : > { %s1362_s30 = scalar_select %p97_p9, %s1230_s10, %s99_s28  }
  0x14   : > { %p1364_p12 = por %p110_p11, %p109_p10  ;;  %p1065_p13 = scmp.lt.s32.totalorder %s1262_s18, 6 }
  0x15   : > { %s148_s4 = sand.u32 1, %s1242_s13   ;;  %s902_s6 = sshll.u32 %s1254_s16, 2 }
  0x16   : > { %s901_s5 = sshll.u32 %s148_s4, 6  ;;  %s159_s11 = scalar_lea.hbm %s1554_s1, %s902_s6 }
  0x17   : > { %s152_s22 = scalar_lea.vmem [#allocation2], %s901_s5  ;;  %s160_s26 = sshll.u32 %s159_s11, 4  ;;  %s161_s26 = int_to_ptr.hbm [resolvable:$true] %s160_s26 }
  0x18   : > { %s162_s23 = sshll.u32 %s152_s22, 4  ;;  %p1062_p0 = pnand %p1065_p13, %p1342_p5  ;;  %s163_s23 = int_to_ptr.vmem [resolvable:$true] %s162_s23 }
  0x19   : > { %s149_s19 = scalar_lea.sflag [#allocation3], %s148_s4  ;;  %s1264_s27 = smov 192  }
  0x1a   : > { %s1265_s28 = smov 64   ;;  %s1266_s21 = smov 4  }
  0x1b   : > { %1064 = dma.hbm_to_vmem [thread:$0]  (!%p1062_p0), %s161_s26, 1024, %s163_s23, %s149_s19, %s1264_s27, %s1265_s28, %s1266_s21  }
  0x1c   : > { %p903_p1 = scmp.ge.s32.totalorder %s1262_s18, 1  ;;  %p170_p2 = scmp.lt.s32.totalorder %s1262_s18, 7 }
  0x1e   : > { %p171_p3 = pnand %p903_p1, %p170_p2 }
  0x1f   : > { %s176_s7 = sand.u32 (!%p171_p3), 1, %s1238_s12  }
  0x20   : > { %174 = sbr.rel (%p171_p3) target bundleno = 269 (0x10d), region = 28  ;;  %s904_s6 = sshll.u32 (!%p171_p3), %s176_s7, 6 }
  0x21   : > { %s177_s5 = scalar_lea.sflag (!%p171_p3), [#allocation3], %s176_s7  ;;  %s1379_s8 = scalar_lea.vmem (!%p171_p3), [#allocation2], %s904_s6 }
  0x25   : > { %1221 = dma.done.wait (%p1355_p8), %s177_s5, 1024  }
  0x26   : > { %1223 = vsyncadd (%p1355_p8), %s177_s5, 4294966272  ;;  %v1033_v0 = vld [vmem:[%s1379_s8 + $0x38] sm:$0xff]  ;;  %v1032_v1 = vld [vmem:[%s1379_s8 + $0x30] sm:$0xff]  ;;  %s906_s21 = sshll.u32 %s1250_s15, 5  ;;  %s206_s22 = sand.u32 1, %s1226_s9  }
  0x27   : > { %480 = vmatpush.bf16.msra.mxu0 %v1033_v0  ;;  %1034 = vmatpush.bf16.msra.mxu1 %v1033_v0  ;;  %v1031_v2 = vld [vmem:[%s1379_s8 + $0x28] sm:$0xff]  ;;  %v1030_v3 = vld [vmem:[%s1379_s8 + $0x20] sm:$0xff]  ;;  %v1029_v4 = vld [vmem:[%s1379_s8 + $0x18] sm:$0xff]  ;;  %p210_p4 = scmp.lt.s32.totalorder %s906_s21, 63  ;;  %s905_s23 = sshll.u32 %s206_s22, 8 }
  0x28   : > { %1035 = vmatpush.bf16.msra.mxu2 %v1033_v0  ;;  %1036 = vmatpush.bf16.msra.mxu3 %v1033_v0  ;;  %v1028_v5 = vld [vmem:[%s1379_s8 + $0x10] sm:$0xff]  ;;  %v1027_v6 = vld [vmem:[%s1379_s8 + $0x8] sm:$0xff]  ;;  %v1026_v7 = vld [vmem:[%s1379_s8] sm:$0xff]  ;;  %s1416_s26 = scalar_lea.vmem [#allocation4], %s905_s23  ;;  %s1058_s9 = smul.u32 (%p1364_p12), 96, %s1250_s15 }
  0x29   : > { %s1578_s21 = smov (!%p210_p4, %s906_s21), 63 }
  0x2a   : > { %s907_s24 = sshll.u32 %s1578_s21, 2  ;;  %s642_s19 = sadd.s32 (%p1364_p12), %s1246_s14, %s1058_s9 }
  0x2b   : > { %481 = vmatpush.bf16.msra.mxu0 %v1032_v1  ;;  %1037 = vmatpush.bf16.msra.mxu1 %v1032_v1  ;;  %s1397_s11 = scalar_lea.vmem %s1553_s0, %s907_s24  ;;  %s1007_s27 = sshll.u32 (%p1364_p12), %s642_s19, 3 }
  0x2c   : > { %1038 = vmatpush.bf16.msra.mxu2 %v1032_v1  ;;  %1039 = vmatpush.bf16.msra.mxu3 %v1032_v1  ;;  %v1010_v8 = vld [vmem:[%s1397_s11] sm:$0xff]  ;;  %v1011_v12 = vld [vmem:[%s1397_s11 + $0x8] sm:$0xff]  ;;  %v1012_v16 = vld [vmem:[%s1397_s11 + $0x10] sm:$0xff]  ;;  %s1459_s3 = scalar_lea.vmem (%p1364_p12), %s1555_s2, %s1007_s27 }
  0x2d   : > { %v1014_v9 = vld [vmem:[%s1397_s11 + $0x20] sm:$0xff]  ;;  %v1015_v13 = vld [vmem:[%s1397_s11 + $0x28] sm:$0xff]  ;;  %v1016_v17 = vld [vmem:[%s1397_s11 + $0x30] sm:$0xff] }
  0x2e   : > { %v1018_v10 = vld [vmem:[%s1397_s11 + $0x40] sm:$0xff]  ;;  %v1019_v14 = vld [vmem:[%s1397_s11 + $0x48] sm:$0xff]  ;;  %v1020_v18 = vld [vmem:[%s1397_s11 + $0x50] sm:$0xff] }
  0x2f   : > { %482 = vmatpush.bf16.msra.mxu0 %v1031_v2  ;;  %1040 = vmatpush.bf16.msra.mxu1 %v1031_v2  ;;  %v1022_v11 = vld [vmem:[%s1397_s11 + $0x60] sm:$0xff]  ;;  %v1023_v15 = vld [vmem:[%s1397_s11 + $0x68] sm:$0xff]  ;;  %v1024_v19 = vld [vmem:[%s1397_s11 + $0x70] sm:$0xff] }
  0x30   : > { %1041 = vmatpush.bf16.msra.mxu2 %v1031_v2  ;;  %1042 = vmatpush.bf16.msra.mxu3 %v1031_v2  ;;  %v1013_v20 = vld [vmem:[%s1397_s11 + $0x18] sm:$0xff] }
  0x31   : > { %v1017_v21 = vld [vmem:[%s1397_s11 + $0x38] sm:$0xff] }
  0x32   : > { %v1021_v22 = vld [vmem:[%s1397_s11 + $0x58] sm:$0xff] }
  0x33   : > { %483 = vmatpush.bf16.msra.mxu0 %v1030_v3  ;;  %1043 = vmatpush.bf16.msra.mxu1 %v1030_v3  ;;  %v1025_v23 = vld [vmem:[%s1397_s11 + $0x78] sm:$0xff] }
  0x34   : > { %1044 = vmatpush.bf16.msra.mxu2 %v1030_v3  ;;  %1045 = vmatpush.bf16.msra.mxu3 %v1030_v3 }
  0x37   : > { %484 = vmatpush.bf16.msra.mxu0 %v1029_v4  ;;  %1046 = vmatpush.bf16.msra.mxu1 %v1029_v4 }
  0x38   : > { %1047 = vmatpush.bf16.msra.mxu2 %v1029_v4  ;;  %1048 = vmatpush.bf16.msra.mxu3 %v1029_v4 }
  0x3b   : > { %485 = vmatpush.bf16.msra.mxu0 %v1028_v5  ;;  %1049 = vmatpush.bf16.msra.mxu1 %v1028_v5 }
  0x3c   : > { %1050 = vmatpush.bf16.msra.mxu2 %v1028_v5  ;;  %1051 = vmatpush.bf16.msra.mxu3 %v1028_v5 }
  0x3f   : > { %486 = vmatpush.bf16.msra.mxu0 %v1027_v6  ;;  %1052 = vmatpush.bf16.msra.mxu1 %v1027_v6 }
  0x40   : > { %1053 = vmatpush.bf16.msra.mxu2 %v1027_v6  ;;  %1054 = vmatpush.bf16.msra.mxu3 %v1027_v6 }
  0x43   : > { %487 = vmatpush.bf16.msra.mxu0 %v1026_v7  ;;  %1055 = vmatpush.bf16.msra.mxu1 %v1026_v7 }
  0x44   : > { %1056 = vmatpush.bf16.msra.mxu2 %v1026_v7  ;;  %1057 = vmatpush.bf16.msra.mxu3 %v1026_v7 }
  0x46   : > { %488 = vmatmul.bf16.vlgmr.msra.gmra.mxu0 %v1010_v8  ;;  %508 = vmatmul.bf16.vlgmr.msra.gmra.mxu1 %v1014_v9 }
  0x47   : > { %528 = vmatmul.bf16.vlgmr.msra.gmra.mxu2 %v1018_v10  ;;  %548 = vmatmul.bf16.vlgmr.msra.gmra.mxu3 %v1022_v11 }
  0x56   : > { %493 = vmatmul.bf16.gmra.mxu0 %v1011_v12  ;;  %513 = vmatmul.bf16.gmra.mxu1 %v1015_v13 }
  0x57   : > { %533 = vmatmul.bf16.gmra.mxu2 %v1019_v14  ;;  %553 = vmatmul.bf16.gmra.mxu3 %v1023_v15 }
  0x66   : > { %498 = vmatmul.bf16.gmra.mxu0 %v1012_v16  ;;  %518 = vmatmul.bf16.gmra.mxu1 %v1016_v17 }
  0x67   : > { %538 = vmatmul.bf16.gmra.mxu2 %v1020_v18  ;;  %558 = vmatmul.bf16.gmra.mxu3 %v1024_v19 }
  0x76   : > { %503 = vmatmul.bf16.gmra.mxu0 %v1013_v20  ;;  %523 = vmatmul.bf16.gmra.mxu1 %v1017_v21 }
  0x77   : > { %543 = vmatmul.bf16.gmra.mxu2 %v1021_v22  ;;  %563 = vmatmul.bf16.gmra.mxu3 %v1025_v23 }
  0xc3   : > { %v489_v24 = vpop.f32.mrf.mxu0  ;;  %v509_v25 = vpop.f32.mrf.mxu1 }
  0xc4   : > { %601 = vst [vmem:[%s1416_s26] sm:$0xff] %v489_v24 }
  0xc5   : > { %609 = vst [vmem:[%s1416_s26 + $0x40] sm:$0xff] %v509_v25 }
  0xca   : > { %v529_v26 = vpop.f32.mrf.mxu2  ;;  %v549_v27 = vpop.f32.mrf.mxu3 }
  0xcb   : > { %v491_v28 = vpop.f32.mrf.mxu0  ;;  %v511_v29 = vpop.f32.mrf.mxu1  ;;  %617 = vst [vmem:[%s1416_s26 + $0x80] sm:$0xff] %v529_v26  ;;  %v735_v56 = vld [vmem:[%s1416_s26] sm:$0xff] (%p1364_p12) }
  0xcc   : > { %625 = vst [vmem:[%s1416_s26 + $0xc0] sm:$0xff] %v549_v27  ;;  %v751_v0 = vld [vmem:[%s1416_s26 + $0x40] sm:$0xff] (%p1364_p12) }
  0xcd   : > { %602 = vst [vmem:[%s1416_s26 + $0x8] sm:$0xff] %v491_v28 }
  0xce   : > { %610 = vst [vmem:[%s1416_s26 + $0x48] sm:$0xff] %v511_v29 }
  0xcf   : > { %736 = vst [vmem:[%s1459_s3] sm:$0xff] (%p1364_p12), %v735_v56 }
  0xd0   : > { %752 = vst [vmem:[%s1459_s3 + $0xc0] sm:$0xff] (%p1364_p12), %v751_v0 }
  0xd2   : > { %v531_v30 = vpop.f32.mrf.mxu2  ;;  %v551_v31 = vpop.f32.mrf.mxu3  ;;  %v767_v8 = vld [vmem:[%s1416_s26 + $0x80] sm:$0xff] (%p1364_p12) }
  0xd3   : > { %v494_v32 = vpop.f32.mrf.mxu0  ;;  %v514_v33 = vpop.f32.mrf.mxu1  ;;  %618 = vst [vmem:[%s1416_s26 + $0x88] sm:$0xff] %v531_v30  ;;  %v783_v16 = vld [vmem:[%s1416_s26 + $0xc0] sm:$0xff] (%p1364_p12) }
  0xd4   : > { %626 = vst [vmem:[%s1416_s26 + $0xc8] sm:$0xff] %v551_v31  ;;  %v737_v57 = vld [vmem:[%s1416_s26 + $0x8] sm:$0xff] (%p1364_p12) }
  0xd5   : > { %603 = vst [vmem:[%s1416_s26 + $0x10] sm:$0xff] %v494_v32  ;;  %v753_v1 = vld [vmem:[%s1416_s26 + $0x48] sm:$0xff] (%p1364_p12) }
  0xd6   : > { %611 = vst [vmem:[%s1416_s26 + $0x50] sm:$0xff] %v514_v33 }
  0xd7   : > { %738 = vst [vmem:[%s1459_s3 + $0x18] sm:$0xff] (%p1364_p12), %v737_v57 }
  0xd8   : > { %754 = vst [vmem:[%s1459_s3 + $0xd8] sm:$0xff] (%p1364_p12), %v753_v1 }
  0xd9   : > { %768 = vst [vmem:[%s1459_s3 + $0x180] sm:$0xff] (%p1364_p12), %v767_v8 }
  0xda   : > { %v534_v34 = vpop.f32.mrf.mxu2  ;;  %v554_v35 = vpop.f32.mrf.mxu3  ;;  %v769_v9 = vld [vmem:[%s1416_s26 + $0x88] sm:$0xff] (%p1364_p12)  ;;  %784 = vst [vmem:[%s1459_s3 + $0x240] sm:$0xff] (%p1364_p12), %v783_v16 }
  0xdb   : > { %v496_v36 = vpop.f32.mrf.mxu0  ;;  %v516_v37 = vpop.f32.mrf.mxu1  ;;  %619 = vst [vmem:[%s1416_s26 + $0x90] sm:$0xff] %v534_v34  ;;  %v785_v17 = vld [vmem:[%s1416_s26 + $0xc8] sm:$0xff] (%p1364_p12) }
  0xdc   : > { %627 = vst [vmem:[%s1416_s26 + $0xd0] sm:$0xff] %v554_v35  ;;  %v739_v58 = vld [vmem:[%s1416_s26 + $0x10] sm:$0xff] (%p1364_p12) }
  0xdd   : > { %604 = vst [vmem:[%s1416_s26 + $0x18] sm:$0xff] %v496_v36  ;;  %v755_v2 = vld [vmem:[%s1416_s26 + $0x50] sm:$0xff] (%p1364_p12) }
  0xde   : > { %612 = vst [vmem:[%s1416_s26 + $0x58] sm:$0xff] %v516_v37 }
  0xdf   : > { %740 = vst [vmem:[%s1459_s3 + $0x30] sm:$0xff] (%p1364_p12), %v739_v58 }
  0xe0   : > { %756 = vst [vmem:[%s1459_s3 + $0xf0] sm:$0xff] (%p1364_p12), %v755_v2 }
  0xe1   : > { %770 = vst [vmem:[%s1459_s3 + $0x198] sm:$0xff] (%p1364_p12), %v769_v9 }
  0xe2   : > { %v536_v38 = vpop.f32.mrf.mxu2  ;;  %v556_v39 = vpop.f32.mrf.mxu3  ;;  %v771_v10 = vld [vmem:[%s1416_s26 + $0x90] sm:$0xff] (%p1364_p12)  ;;  %786 = vst [vmem:[%s1459_s3 + $0x258] sm:$0xff] (%p1364_p12), %v785_v17 }
  0xe3   : > { %v499_v40 = vpop.f32.mrf.mxu0  ;;  %v519_v41 = vpop.f32.mrf.mxu1  ;;  %620 = vst [vmem:[%s1416_s26 + $0x98] sm:$0xff] %v536_v38  ;;  %v787_v18 = vld [vmem:[%s1416_s26 + $0xd0] sm:$0xff] (%p1364_p12) }
  0xe4   : > { %628 = vst [vmem:[%s1416_s26 + $0xd8] sm:$0xff] %v556_v39  ;;  %v741_v59 = vld [vmem:[%s1416_s26 + $0x18] sm:$0xff] (%p1364_p12) }
  0xe5   : > { %605 = vst [vmem:[%s1416_s26 + $0x20] sm:$0xff] %v499_v40  ;;  %v757_v3 = vld [vmem:[%s1416_s26 + $0x58] sm:$0xff] (%p1364_p12) }
  0xe6   : > { %613 = vst [vmem:[%s1416_s26 + $0x60] sm:$0xff] %v519_v41 }
  0xe7   : > { %742 = vst [vmem:[%s1459_s3 + $0x48] sm:$0xff] (%p1364_p12), %v741_v59 }
  0xe8   : > { %758 = vst [vmem:[%s1459_s3 + $0x108] sm:$0xff] (%p1364_p12), %v757_v3 }
  0xe9   : > { %772 = vst [vmem:[%s1459_s3 + $0x1b0] sm:$0xff] (%p1364_p12), %v771_v10 }
  0xea   : > { %v539_v42 = vpop.f32.mrf.mxu2  ;;  %v559_v43 = vpop.f32.mrf.mxu3  ;;  %v773_v11 = vld [vmem:[%s1416_s26 + $0x98] sm:$0xff] (%p1364_p12)  ;;  %788 = vst [vmem:[%s1459_s3 + $0x270] sm:$0xff] (%p1364_p12), %v787_v18 }
  0xeb   : > { %v501_v44 = vpop.f32.mrf.mxu0  ;;  %v521_v45 = vpop.f32.mrf.mxu1  ;;  %621 = vst [vmem:[%s1416_s26 + $0xa0] sm:$0xff] %v539_v42  ;;  %v789_v19 = vld [vmem:[%s1416_s26 + $0xd8] sm:$0xff] (%p1364_p12) }
  0xec   : > { %629 = vst [vmem:[%s1416_s26 + $0xe0] sm:$0xff] %v559_v43  ;;  %v743_v60 = vld [vmem:[%s1416_s26 + $0x20] sm:$0xff] (%p1364_p12) }
  0xed   : > { %606 = vst [vmem:[%s1416_s26 + $0x28] sm:$0xff] %v501_v44  ;;  %v759_v4 = vld [vmem:[%s1416_s26 + $0x60] sm:$0xff] (%p1364_p12) }
  0xee   : > { %614 = vst [vmem:[%s1416_s26 + $0x68] sm:$0xff] %v521_v45 }
  0xef   : > { %744 = vst [vmem:[%s1459_s3 + $0x60] sm:$0xff] (%p1364_p12), %v743_v60 }
  0xf0   : > { %760 = vst [vmem:[%s1459_s3 + $0x120] sm:$0xff] (%p1364_p12), %v759_v4 }
  0xf1   : > { %774 = vst [vmem:[%s1459_s3 + $0x1c8] sm:$0xff] (%p1364_p12), %v773_v11 }
  0xf2   : > { %v541_v46 = vpop.f32.mrf.mxu2  ;;  %v561_v47 = vpop.f32.mrf.mxu3  ;;  %v775_v12 = vld [vmem:[%s1416_s26 + $0xa0] sm:$0xff] (%p1364_p12)  ;;  %790 = vst [vmem:[%s1459_s3 + $0x288] sm:$0xff] (%p1364_p12), %v789_v19 }
  0xf3   : > { %v504_v48 = vpop.f32.mrf.mxu0  ;;  %v524_v49 = vpop.f32.mrf.mxu1  ;;  %622 = vst [vmem:[%s1416_s26 + $0xa8] sm:$0xff] %v541_v46  ;;  %v791_v20 = vld [vmem:[%s1416_s26 + $0xe0] sm:$0xff] (%p1364_p12) }
  0xf4   : > { %630 = vst [vmem:[%s1416_s26 + $0xe8] sm:$0xff] %v561_v47  ;;  %v745_v61 = vld [vmem:[%s1416_s26 + $0x28] sm:$0xff] (%p1364_p12) }
  0xf5   : > { %607 = vst [vmem:[%s1416_s26 + $0x30] sm:$0xff] %v504_v48  ;;  %v761_v5 = vld [vmem:[%s1416_s26 + $0x68] sm:$0xff] (%p1364_p12) }
  0xf6   : > { %615 = vst [vmem:[%s1416_s26 + $0x70] sm:$0xff] %v524_v49 }
  0xf7   : > { %746 = vst [vmem:[%s1459_s3 + $0x78] sm:$0xff] (%p1364_p12), %v745_v61 }
  0xf8   : > { %762 = vst [vmem:[%s1459_s3 + $0x138] sm:$0xff] (%p1364_p12), %v761_v5 }
  0xf9   : > { %776 = vst [vmem:[%s1459_s3 + $0x1e0] sm:$0xff] (%p1364_p12), %v775_v12 }
  0xfa   : > { %v544_v50 = vpop.f32.mrf.mxu2  ;;  %v564_v51 = vpop.f32.mrf.mxu3  ;;  %v777_v13 = vld [vmem:[%s1416_s26 + $0xa8] sm:$0xff] (%p1364_p12)  ;;  %792 = vst [vmem:[%s1459_s3 + $0x2a0] sm:$0xff] (%p1364_p12), %v791_v20 }
  0xfb   : > { %v506_v52 = vpop.f32.mrf.mxu0  ;;  %v526_v53 = vpop.f32.mrf.mxu1  ;;  %623 = vst [vmem:[%s1416_s26 + $0xb0] sm:$0xff] %v544_v50  ;;  %v793_v21 = vld [vmem:[%s1416_s26 + $0xe8] sm:$0xff] (%p1364_p12) }
  0xfc   : > { %631 = vst [vmem:[%s1416_s26 + $0xf0] sm:$0xff] %v564_v51  ;;  %v747_v62 = vld [vmem:[%s1416_s26 + $0x30] sm:$0xff] (%p1364_p12) }
  0xfd   : > { %608 = vst [vmem:[%s1416_s26 + $0x38] sm:$0xff] %v506_v52  ;;  %v763_v6 = vld [vmem:[%s1416_s26 + $0x70] sm:$0xff] (%p1364_p12) }
  0xfe   : > { %616 = vst [vmem:[%s1416_s26 + $0x78] sm:$0xff] %v526_v53 }
  0xff   : > { %748 = vst [vmem:[%s1459_s3 + $0x90] sm:$0xff] (%p1364_p12), %v747_v62 }
 0x100   : > { %639 = sbr.rel (!%p1364_p12) target bundleno = 269 (0x10d), region = 40  ;;  %764 = vst [vmem:[%s1459_s3 + $0x150] sm:$0xff] (%p1364_p12), %v763_v6 }
 0x101   : > { %778 = vst [vmem:[%s1459_s3 + $0x1f8] sm:$0xff] (%p1364_p12), %v777_v13 }
 0x102   : > { %v546_v54 = vpop.f32.mrf.mxu2  ;;  %v566_v55 = vpop.f32.mrf.mxu3  ;;  %v779_v14 = vld [vmem:[%s1416_s26 + $0xb0] sm:$0xff] (%p1364_p12)  ;;  %794 = vst [vmem:[%s1459_s3 + $0x2b8] sm:$0xff] (%p1364_p12), %v793_v21 }
 0x103   : > { %624 = vst [vmem:[%s1416_s26 + $0xb8] sm:$0xff] %v546_v54  ;;  %v795_v22 = vld [vmem:[%s1416_s26 + $0xf0] sm:$0xff] (%p1364_p12) }
 0x104   : > { %632 = vst [vmem:[%s1416_s26 + $0xf8] sm:$0xff] %v566_v55  ;;  %v749_v63 = vld [vmem:[%s1416_s26 + $0x38] sm:$0xff] (%p1364_p12) }
 0x105   : > { %750 = vst [vmem:[%s1459_s3 + $0xa8] sm:$0xff] %v749_v63  ;;  %v765_v7 = vld [vmem:[%s1416_s26 + $0x78] sm:$0xff] }
 0x106   : > { %766 = vst [vmem:[%s1459_s3 + $0x168] sm:$0xff] %v765_v7 }
 0x107   : > { %780 = vst [vmem:[%s1459_s3 + $0x210] sm:$0xff] %v779_v14 }
 0x108   : > { %796 = vst [vmem:[%s1459_s3 + $0x2d0] sm:$0xff] %v795_v22 }
 0x10a   : > { %v781_v15 = vld [vmem:[%s1416_s26 + $0xb8] sm:$0xff] }
 0x10b   : > { %782 = vst [vmem:[%s1459_s3 + $0x228] sm:$0xff] %v781_v15  ;;  %v797_v23 = vld [vmem:[%s1416_s26 + $0xf8] sm:$0xff] }
 0x10c   : > { %798 = vst [vmem:[%s1459_s3 + $0x2e8] sm:$0xff] %v797_v23 }
 0x10d PF: > { %s15_s18 = sadd.s32 1, %s1262_s18   ;;  %s1561_s6 = sld [smem:[#allocation6_spill]] }
 0x10e   : > { %p12_p5 = scmp.ge.s32.totalorder %s15_s18, 8   ;;  %s1562_s9 = smov %s1230_s10 }
 0x10f   : > { %s1563_s10 = smov %s1362_s30  ;;  %s1564_s11 = smov %s1238_s12 }
 0x110   : > { %s1565_s12 = smov %s1242_s13  ;;  %s1566_s13 = smov %s1350_s25 }
 0x111   : > { %s1567_s14 = smov %s1254_s16  ;;  %s1568_s15 = smov %s1258_s17 }
 0x112   : > { %s1569_s16 = smov %s1572_s20  ;;  %14 = sbr.rel (!%p12_p5) target bundleno = 6 (0x6), region = 113 }
 0x113   : > { %s1570_s17 = smov %s1561_s6 }
 0x117   :  { %814 = vsyncpa [#allocation3], 1 }
 0x118   :  { %816 = vsyncpa [#allocation3 + $0x1], 1 }

</bundles_post_ra>
